<compile_context>
chip_gen: v7x
topology: tpu7x:2x2x1
jax: 0.10.0
libtpu: 0.0.40
codegen_flags: <defaults>
</compile_context>

<pallas_src>
import functools

import jax
import jax.numpy as jnp
from jax.experimental import pallas as pl
from jax.experimental.pallas import tpu as pltpu


def _conv_matmul_kernel(w_ref, b_ref, p_ref, o_ref):
    """One fat MXU matmul per grid step.

    w_ref: (Cout, K*K*Cin)   flattened conv weights (compute dtype, e.g. bf16)
    b_ref: (Cout, 1)         bias, f32
    p_ref: (K*K*Cin, TM)     im2col patch tile, M = N*H*W on the lane axis
    o_ref: (Cout, TM)        output tile (f32 for the final layer, bf16 otherwise)
    """
    acc = jnp.dot(w_ref[...], p_ref[...], preferred_element_type=jnp.float32)
    o_ref[...] = (acc + b_ref[...]).astype(o_ref.dtype)   # f32 epilogue (v5e-safe)


def _choose_block_m(M, KKC, Cout, *, target_steps, compute_itemsize, out_itemsize,
                    vmem_budget_bytes=24 << 20):
    """Pick a lane-dense M tile: `target_steps` fat steps, capped by a VMEM budget.

    Budget is derived for the worst case (v7x: 64 MiB physical / 32 MiB scoped
    default), so the same choice is safe on v5e/v6e's 128 MiB as well.
    """
    ideal = pl.cdiv(pl.cdiv(M, target_steps), 128) * 128
    # Per-M-column bytes, double-buffered patch + output tiles; weights/bias resident.
    per_col = 2 * (KKC * compute_itemsize + Cout * out_itemsize)
    resident = 2 * Cout * KKC * compute_itemsize + 4 * Cout
    max_cols = max(128, (vmem_budget_bytes - resident) // per_col)
    max_block = (max_cols // 128) * 128
    return max(128, min(ideal, max_block))


def conv2d_same_cf_pallas(x_cnhw, weight_oihw, bias, *, out_dtype=jnp.float32,
                          compute_dtype=jnp.bfloat16, target_steps=2):
    """'same' conv over channel-first activations: (Cin, N, H, W) -> (Cout, N, H, W)."""
    Cin, N, H, W = x_cnhw.shape
    Cout, _, K, _ = weight_oihw.shape
    pad = (K - 1) // 2
    KK = K * K
    KKC = KK * Cin
    M = N * H * W

    # ---- im2col on the already channel-first input --------------------------
    # Taps stack directly into (KK, Cin, N, H, W) so the reshape to (KKC, M) is
    # pure metadata: no transpose of the 9x-blown-up patch tensor in HBM.
    # TODO(synk): for production shapes with Cin >= ~8, fuse im2col into the
    # kernel (DMA the raw (Cin, N, Hp, Wp) halo tile into VMEM once and form the
    # 9 taps via shifted slices feeding accumulating matmuls) to avoid the 9x
    # HBM patch materialization entirely.
    xp = jnp.pad(x_cnhw, ((0, 0), (0, 0), (pad, pad), (pad, pad)))
    taps = [xp[:, :, dy:dy + H, dx:dx + W]          # each (Cin, N, H, W)
            for dy in range(K) for dx in range(K)]
    patches = jnp.stack(taps, axis=0)               # (KK, Cin, N, H, W)
    patches = patches.reshape(KKC, M).astype(compute_dtype)

    # Weights flattened to (Cout, KK*Cin) matching the patch row ordering
    # (tap-major, cin-minor).
    w_flat = jnp.transpose(weight_oihw, (0, 2, 3, 1)).reshape(Cout, KKC)
    w_flat = w_flat.astype(compute_dtype)
    b2d = bias.reshape(Cout, 1).astype(jnp.float32)

    # ---- lane-dense tiling of M: few fat steps -------------------------------
    c_isz = jnp.dtype(compute_dtype).itemsize
    o_isz = jnp.dtype(out_dtype).itemsize
    block_m = _choose_block_m(M, KKC, Cout, target_steps=target_steps,
                              compute_itemsize=c_isz, out_itemsize=o_isz)
    grid_m = pl.cdiv(M, block_m)
    m_padded = grid_m * block_m
    if m_padded != M:
        patches = jnp.pad(patches, ((0, 0), (0, m_padded - M)))

    cost = pl.CostEstimate(
        flops=2 * m_padded * KKC * Cout,
        transcendentals=0,
        bytes_accessed=(KKC * m_padded * c_isz      # patches
                        + Cout * KKC * c_isz        # weights
                        + Cout * 4                  # bias
                        + Cout * m_padded * o_isz)) # output

    out = pl.pallas_call(
        _conv_matmul_kernel,
        out_shape=jax.ShapeDtypeStruct((Cout, m_padded), out_dtype),
        grid=(grid_m,),
        in_specs=[
            pl.BlockSpec((Cout, KKC), lambda i: (0, 0)),      # weights (resident)
            pl.BlockSpec((Cout, 1), lambda i: (0, 0)),        # bias    (resident)
            pl.BlockSpec((KKC, block_m), lambda i: (0, i)),   # patch tile
        ],
        out_specs=pl.BlockSpec((Cout, block_m), lambda i: (0, i)),
        compiler_params=pltpu.CompilerParams(
            dimension_semantics=("parallel",)),
        cost_estimate=cost,
    )(w_flat, b2d, patches)

    if m_padded != M:
        out = out[:, :M]
    return out.reshape(Cout, N, H, W)                # stays channel-first


def conv_lstm2d_forward(x, weights, biases, hidden_channels, hidden_states=None,
                        *, compute_dtype=jnp.bfloat16, target_steps=2):
    """Mirrors ConvLSTM2D.forward.

    x: (B, T, Cin, H, W)  ->  (outputs (B, T, Chid, H, W), (h_list, c_list))
    """
    B, T, Cin, H, W = x.shape
    num_layers = len(weights)

    if hidden_states is None:
        c = [jnp.zeros((B, hidden_channels, H, W), jnp.float32)
             for _ in range(num_layers)]
    else:
        # Reference overwrites h unconditionally but returns the passed-in c.
        _, c = hidden_states

    # No recurrence in the reference module, so (B, T) are independent and are
    # flattened into one big M axis.  Go channel-first ONCE here, at 1x input
    # size, before the 9x im2col blow-up.
    y = x.reshape(B * T, Cin, H, W).transpose(1, 0, 2, 3)   # (Cin, B*T, H, W)

    h = []
    for layer in range(num_layers):
        is_last = layer == num_layers - 1
        # Intermediate layers stay in kernel-native channel-first layout and
        # emit bf16 (next layer casts to bf16 anyway); final layer emits f32.
        layer_out_dtype = jnp.float32 if is_last else compute_dtype
        y = conv2d_same_cf_pallas(y, weights[layer], biases[layer],
                                  out_dtype=layer_out_dtype,
                                  compute_dtype=compute_dtype,
                                  target_steps=target_steps)
        # h[layer] is this layer's conv output at the final timestep.
        h_cf = y.reshape(hidden_channels, B, T, H, W)[:, :, -1]   # (Chid, B, H, W)
        h.append(jnp.transpose(h_cf, (1, 0, 2, 3)).astype(jnp.float32))

    outputs = jnp.transpose(y.reshape(hidden_channels, B, T, H, W),
                            (1, 2, 0, 3, 4))                      # (B, T, Chid, H, W)
    return outputs, (h, c)


def init_conv_params(key, in_ch, out_ch, k):
    """Deterministic PyTorch-style Conv2d init: U(-s, s), s = 1/sqrt(in_ch*k*k)."""
    kw, kb = jax.random.split(key)
    s = 1.0 / jnp.sqrt(in_ch * k * k)
    weight = jax.random.uniform(kw, (out_ch, in_ch, k, k), jnp.float32, -s, s)
    bias = jax.random.uniform(kb, (out_ch,), jnp.float32, -s, s)
    return weight, bias


if __name__ == "__main__":
    # Small shapes consistent with the module (input_channels=1, hidden=32, k=3).
    batch, seq_len = 2, 8
    input_channels, hidden_channels, kernel_size = 1, 32, 3
    height = width = 16

    key = jax.random.PRNGKey(0)
    kx, kp, kp2 = jax.random.split(key, 3)
    x = jax.random.normal(
        kx, (batch, seq_len, input_channels, height, width), jnp.float32)
    weight, bias = init_conv_params(kp, input_channels, hidden_channels,
                                    kernel_size)

    fwd = jax.jit(functools.partial(conv_lstm2d_forward,
                                    hidden_channels=hidden_channels))
    outputs, (h, c) = fwd(x, [weight], [bias])
    outputs = jax.block_until_ready(outputs)

    # --- correctness checks: single layer ------------------------------------
    x_flat = x.reshape(batch * seq_len, input_channels, height, width)

    def conv_ref_bf16(inp, w, b):
        """XLA conv on the SAME bf16-rounded operands, f32 accumulation."""
        y = jax.lax.conv_general_dilated(
            inp.astype(jnp.bfloat16).astype(jnp.float32),
            w.astype(jnp.bfloat16).astype(jnp.float32),
            window_strides=(1, 1), padding="SAME",
            dimension_numbers=("NCHW", "OIHW", "NCHW"))
        return y + b[None, :, None, None]

    ref_bf16 = conv_ref_bf16(x_flat, weight, bias).reshape(
        batch, seq_len, hidden_channels, height, width)

    # Loose sanity check against the full-precision reference.
    ref_f32 = jax.lax.conv_general_dilated(
        x_flat, weight, window_strides=(1, 1), padding="SAME",
        dimension_numbers=("NCHW", "OIHW", "NCHW"))
    ref_f32 = (ref_f32 + bias[None, :, None, None]).reshape(
        batch, seq_len, hidden_channels, height, width)

    assert outputs.shape == (batch, seq_len, hidden_channels, height, width)
    assert h[0].shape == (batch, hidden_channels, height, width)
    assert c[0].shape == (batch, hidden_channels, height, width)
    assert jnp.allclose(outputs, ref_bf16, atol=1e-4, rtol=1e-3)
    assert jnp.allclose(outputs, ref_f32, atol=1e-1, rtol=5e-2)
    assert jnp.allclose(h[0], outputs[:, -1])
    assert jnp.all(c[0] == 0)

    # --- correctness checks: two layers (channel-first chaining + bf16 mid) ---
    weight2, bias2 = init_conv_params(kp2, hidden_channels, hidden_channels,
                                      kernel_size)
    outputs2, (h2, c2) = jax.jit(functools.partial(
        conv_lstm2d_forward, hidden_channels=hidden_channels))(
            x, [weight, weight2], [bias, bias2])
    outputs2 = jax.block_until_ready(outputs2)

    mid = conv_ref_bf16(x_flat, weight, bias)
    mid = mid.astype(jnp.bfloat16).astype(jnp.float32)      # bf16 intermediate
    ref2 = conv_ref_bf16(mid, weight2, bias2).reshape(
        batch, seq_len, hidden_channels, height, width)

    assert outputs2.shape == (batch, seq_len, hidden_channels, height, width)
    assert jnp.allclose(outputs2, ref2, atol=1e-3, rtol=1e-2)
    assert jnp.allclose(h2[-1], outputs2[:, -1])
    assert jnp.all(c2[0] == 0) and jnp.all(c2[1] == 0)

    print("KERNEL_OK")
</pallas_src>

<mosaic_0001>
module attributes {stable_mosaic.version = 11 : i64} {
  func.func @_conv_matmul_kernel(%arg0: i32, %arg1: memref<32x9xbf16, #tpu.memory_space<vmem>>, %arg2: memref<32x1xf32, #tpu.memory_space<vmem>>, %arg3: memref<9x2048xbf16, #tpu.memory_space<vmem>>, %arg4: memref<32x2048xf32, #tpu.memory_space<vmem>>) attributes {dimension_semantics = [#tpu.dimension_semantics<parallel>], iteration_bounds = array<i64: 2>, scalar_prefetch = 0 : i64, scratch_operands = 0 : i64, tpu.core_type = #tpu.core_type<tc>, window_params = [{pipeline_mode = #tpu.pipeline_mode<synchronous>, transform_indices = @transform_0, window_bounds = array<i64: 32, 9>}, {pipeline_mode = #tpu.pipeline_mode<synchronous>, transform_indices = @transform_1, window_bounds = array<i64: 32, 1>}, {transform_indices = @transform_2, window_bounds = array<i64: 9, 2048>}, {transform_indices = @transform_3, window_bounds = array<i64: 32, 2048>}]} {
    %c0 = arith.constant 0 : index
    %c0_0 = arith.constant 0 : index
    %0 = vector.load %arg1[%c0, %c0_0] : memref<32x9xbf16, #tpu.memory_space<vmem>>, vector<32x9xbf16>
    %c0_1 = arith.constant 0 : index
    %c0_2 = arith.constant 0 : index
    %1 = vector.load %arg3[%c0_1, %c0_2] : memref<9x2048xbf16, #tpu.memory_space<vmem>>, vector<9x2048xbf16>
    %cst = arith.constant dense<0.000000e+00> : vector<32x2048xf32>
    %2 = tpu.matmul %0, %1, %cst {dimension_numbers = #tpu.dot_dimension_numbers<[1], [0], [0], [1], [0, 0, 1, 1], [], []>} : vector<32x9xbf16>, vector<9x2048xbf16>, vector<32x2048xf32> -> vector<32x2048xf32>
    %c0_3 = arith.constant 0 : index
    %c0_4 = arith.constant 0 : index
    %3 = vector.load %arg2[%c0_3, %c0_4] : memref<32x1xf32, #tpu.memory_space<vmem>>, vector<32x1xf32>
    %4 = vector.broadcast %3 : vector<32x1xf32> to vector<32x2048xf32>
    %5 = arith.addf %2, %4 : vector<32x2048xf32>
    %c0_5 = arith.constant 0 : index
    %c0_6 = arith.constant 0 : index
    %6 = vector.load %arg4[%c0_5, %c0_6] : memref<32x2048xf32, #tpu.memory_space<vmem>>, vector<32x2048xf32>
    tpu.vector_store %arg4[%c0_5, %c0_6], %5 {strides = array<i32>} : memref<32x2048xf32, #tpu.memory_space<vmem>>, vector<32x2048xf32>,
    return
  }
  func.func @transform_0(%arg0: i32) -> (i32, i32) {
    %c0_i32 = arith.constant 0 : i32
    %c0_i32_0 = arith.constant 0 : i32
    %c0_i32_1 = arith.constant 0 : i32
    return %c0_i32, %c0_i32_0 : i32, i32
  }
  func.func @transform_1(%arg0: i32) -> (i32, i32) {
    %c0_i32 = arith.constant 0 : i32
    %c0_i32_0 = arith.constant 0 : i32
    %c0_i32_1 = arith.constant 0 : i32
    return %c0_i32, %c0_i32_0 : i32, i32
  }
  func.func @transform_2(%arg0: i32) -> (i32, i32) {
    %c0_i32 = arith.constant 0 : i32
    %c0_i32_0 = arith.constant 0 : i32
    return %c0_i32, %arg0 : i32, i32
  }
  func.func @transform_3(%arg0: i32) -> (i32, i32) {
    %c0_i32 = arith.constant 0 : i32
    %c0_i32_0 = arith.constant 0 : i32
    return %c0_i32, %arg0 : i32, i32
  }
}

</mosaic_0001>

<bundles_post_ra>
// kernel: conv_lstm2d_forward.1
= control target key start
LH: loop header
LB: loop body
LE: loop exit
PB: predicated region body
PF: predicated region fallthrough
CT: control target
= control target key end

     0   :  { %s1219_s12 = smov 0   ;;  %s1221_s13 = smov 0   ;;  %s1667_s0 = inlined_call_operand.vmem [shape: bf16[32,9], index: 0, kind: input, shape index: {}]   ;;  %s1668_s1 = inlined_call_operand.vmem [shape: f32[32,1], index: 1, kind: input, shape index: {}]   ;;  %s1669_s2 = inlined_call_operand.vmem [shape: bf16[9,4096], index: 2, kind: input, shape index: {}]   ;;  %s1670_s3 = inlined_call_operand.vmem [shape: f32[32,4096], index: 3, kind: output, shape index: {}]  }
   0x1   :  { %s1223_s14 = smov 0  }
   0x2 LB: > { %s1092_s15 = sadd.s32 4294967295, %s1195_s14   ;;  %s1236_s16 = sadd.s32 1, %s1195_s14   ;;  %s1195_s14 = sphi %s1223_s14, %s1674_s14   ;;  %s1191_s13 = sphi %s1221_s13, %s1673_s13   ;;  %s1187_s12 = sphi %s1219_s12, %s1672_s12  }
   0x3   : > { %s59_s17 = ssub.s32 %s1195_s14, %s1236_s16  ;;  %s62_s18 = sadd.s32 1, %s1191_s13 }
   0x4   : > { %p60_p0 = scmp.eq.s32.totalorder %s59_s17, 0  ;;  %p69_p1 = scmp.ne.s32.totalorder %s1191_s13, %s1187_s12 }
   0x5   : > { %p70_p2 = scmp.eq.s32.totalorder %s1195_s14, 0  ;;  %p99_p3 = scmp.eq.s32.totalorder %s1092_s15, 1 }
   0x6   : > { %s1247_s19 = scalar_select %p60_p0, %s1191_s13, %s62_s18  }
   0x7   : > { %p71_p4 = por %p70_p2, %p69_p1  ;;  %p1249_p5 = por %p99_p3, %p69_p1 }
   0x8   : > { %p1095_p6 = scmp.ge.s32.totalorder %s1195_s14, 2 }
   0xa   : > { %127 = sbr.rel (%p1095_p6) target bundleno = 29 (0x1d), region = 24 }
  0x11   : > { %130 = sbr.rel (!%p71_p4) target bundleno = 29 (0x1d), region = 28  ;;  %s132_s21 = sand.u32 (%p71_p4), 1, %s1191_s13  }
  0x12   : > { %s1141_s22 = sshll.u32 (%p71_p4), %s1195_s14, 6  ;;  %s1096_s23 = sshll.u32 (%p71_p4), %s132_s21, 7 }
  0x13   : > { %s1259_s26 = scalar_lea.vmem (%p71_p4), %s1669_s2, %s1141_s22  ;;  %s134_s27 = scalar_lea.vmem (%p71_p4), [#allocation2], %s1096_s23 }
  0x14   : > { %v150_v0 = vld [vmem:[%s1259_s26] sm:$0xff] (%p71_p4)  ;;  %v152_v1 = vld [vmem:[%s1259_s26 + $0x8] sm:$0xff] (%p71_p4)  ;;  %v154_v2 = vld [vmem:[%s1259_s26 + $0x10] sm:$0xff] (%p71_p4) }
  0x15   : > { %151 = vst [vmem:[%s134_s27] sm:$0xff] (%p71_p4), %v150_v0  ;;  %153 = vst [vmem:[%s134_s27 + $0x8] sm:$0xff] (%p71_p4), %v152_v1  ;;  %v156_v3 = vld [vmem:[%s1259_s26 + $0x18] sm:$0xff] (%p71_p4)  ;;  %v158_v4 = vld [vmem:[%s1259_s26 + $0x20] sm:$0xff] (%p71_p4) }
  0x16   : > { %155 = vst [vmem:[%s134_s27 + $0x10] sm:$0xff] (%p71_p4), %v154_v2  ;;  %v160_v5 = vld [vmem:[%s1259_s26 + $0x28] sm:$0xff] (%p71_p4)  ;;  %157 = vst [vmem:[%s134_s27 + $0x18] sm:$0xff] (%p71_p4), %v156_v3  ;;  %v162_v6 = vld [vmem:[%s1259_s26 + $0x30] sm:$0xff] (%p71_p4) }
  0x17   : > { %159 = vst [vmem:[%s134_s27 + $0x20] sm:$0xff] (%p71_p4), %v158_v4  ;;  %161 = vst [vmem:[%s134_s27 + $0x28] sm:$0xff] (%p71_p4), %v160_v5  ;;  %v164_v7 = vld [vmem:[%s1259_s26 + $0x38] sm:$0xff] (%p71_p4)  ;;  %v166_v8 = vld [vmem:[%s1259_s26 + $0x80] sm:$0xff] (%p71_p4) }
  0x18   : > { %163 = vst [vmem:[%s134_s27 + $0x30] sm:$0xff] %v162_v6  ;;  %165 = vst [vmem:[%s134_s27 + $0x38] sm:$0xff] %v164_v7  ;;  %v168_v9 = vld [vmem:[%s1259_s26 + $0x88] sm:$0xff]  ;;  %v170_v10 = vld [vmem:[%s1259_s26 + $0x90] sm:$0xff] }
  0x19   : > { %167 = vst [vmem:[%s134_s27 + $0x40] sm:$0xff] %v166_v8  ;;  %v172_v11 = vld [vmem:[%s1259_s26 + $0x98] sm:$0xff]  ;;  %169 = vst [vmem:[%s134_s27 + $0x48] sm:$0xff] %v168_v9  ;;  %v174_v12 = vld [vmem:[%s1259_s26 + $0xa0] sm:$0xff] }
  0x1a   : > { %171 = vst [vmem:[%s134_s27 + $0x50] sm:$0xff] %v170_v10  ;;  %173 = vst [vmem:[%s134_s27 + $0x58] sm:$0xff] %v172_v11  ;;  %v176_v13 = vld [vmem:[%s1259_s26 + $0xa8] sm:$0xff]  ;;  %v178_v14 = vld [vmem:[%s1259_s26 + $0xb0] sm:$0xff] }
  0x1b   : > { %175 = vst [vmem:[%s134_s27 + $0x60] sm:$0xff] %v174_v12  ;;  %177 = vst [vmem:[%s134_s27 + $0x68] sm:$0xff] %v176_v13  ;;  %v180_v15 = vld [vmem:[%s1259_s26 + $0xb8] sm:$0xff] }
  0x1c   : > { %179 = vst [vmem:[%s134_s27 + $0x70] sm:$0xff] %v178_v14  ;;  %181 = vst [vmem:[%s134_s27 + $0x78] sm:$0xff] %v180_v15 }
  0x1d PF: > { %p1099_p7 = scmp.ge.s32.totalorder %s1195_s14, 1  ;;  %p186_p8 = scmp.lt.s32.totalorder %s1195_s14, 3 }
  0x1f   : > { %p187_p9 = pnand %p1099_p7, %p186_p8 }
  0x20   : > { %s193_s28 = sand.u32 (!%p187_p9), 1, %s1187_s12   ;;  %vm343_vm0 = vcmask (!%p187_p9), 1043456   ;;  %vm344_vm1 = vcmask (!%p187_p9), 1044480   ;;  %v1197_v16 = vmov (!%p187_p9), 65535   ;;  %v1198_v18 = vmov (!%p187_p9), 0   ;;  %v1310_v45 = vld [vmem:[%s1667_s0] sm:$0xff] (!%p187_p9)  }
  0x21   : > { %190 = sbr.rel (%p187_p9) target bundleno = 340 (0x154), region = 51  ;;  %s1100_s29 = sshll.u32 (!%p187_p9), %s193_s28, 7  ;;  %v345_v17 = vsel (!%p187_p9), %vm343_vm0, 4294967295, %v1197_v16  ;;  %427 = vmatprep.mubr.bf16.mxu0 (!%p187_p9), %v1198_v18  ;;  %480 = vmatprep.mubr.bf16.mxu1 (!%p187_p9), %v1198_v18  ;;  %vm336_vm2 = vcmask (!%p187_p9), 72704   ;;  %v238_v50 = vld [vmem:[%s1668_s1] sm:$0xff] (!%p187_p9)  ;;  %v239_v54 = vld [vmem:[%s1668_s1 + $0x8] sm:$0xff] (!%p187_p9) }
  0x22   : > { %1169 = vset.pattern.permute.xlu0 (!%p187_p9), %v1198_v18  ;;  %1170 = vset.pattern.permute.xlu1 (!%p187_p9), %v1198_v18  ;;  %s1286_s30 = scalar_lea.vmem (!%p187_p9), [#allocation2], %s1100_s29  ;;  %v1290_v21 = vsel (!%p187_p9), %vm344_vm1, %v345_v17, 0  ;;  %v240_v55 = vld [vmem:[%s1668_s1 + $0x10] sm:$0xff] (!%p187_p9)  ;;  %v1172_v56 = vld [vmem:[%s1667_s0 + $0x8] sm:$0xff] (!%p187_p9)   ;;  %v241_v57 = vld [vmem:[%s1668_s1 + $0x18] sm:$0xff] (!%p187_p9)  ;;  %s1101_s23 = sshll.u32 (!%p187_p9), %s193_s28, 9 }
  0x23   : > { %v222_v19 = vld [vmem:[%s1286_s30] sm:$0xff] (!%p187_p9)  ;;  %v223_v22 = vld [vmem:[%s1286_s30 + $0x8] sm:$0xff] (!%p187_p9)  ;;  %v224_v26 = vld [vmem:[%s1286_s30 + $0x10] sm:$0xff] (!%p187_p9)  ;;  %244 = vperm.xlu0 (!%p187_p9), %1169, %v238_v50   ;;  %254 = vperm.xlu1 (!%p187_p9), %1170, %v240_v55   ;;  %s1391_s24 = scalar_lea.vmem (!%p187_p9), [#allocation3], %s1101_s23 }
  0x24   : > { %v230_v20 = vld [vmem:[%s1286_s30 + $0x40] sm:$0x11] (!%p187_p9)  ;;  %v231_v24 = vld [vmem:[%s1286_s30 + $0x48] sm:$0x11] (!%p187_p9)  ;;  %v232_v27 = vld [vmem:[%s1286_s30 + $0x50] sm:$0x11] (!%p187_p9) }
  0x25   : > { %v1105_v23 = vcombine.high (!%p187_p9), %v222_v19, %v230_v20  ;;  %v1104_v25 = vcombine.low (!%p187_p9), %v222_v19, %v230_v20  ;;  %v1107_v28 = vcombine.high (!%p187_p9), %v223_v22, %v231_v24  ;;  %v1106_v29 = vcombine.low (!%p187_p9), %v223_v22, %v231_v24  ;;  %v225_v32 = vld [vmem:[%s1286_s30 + $0x18] sm:$0xff] (!%p187_p9)  ;;  %v226_v38 = vld [vmem:[%s1286_s30 + $0x20] sm:$0xff] (!%p187_p9)  ;;  %v227_v43 = vld [vmem:[%s1286_s30 + $0x28] sm:$0xff] (!%p187_p9) }
  0x26   : > { %v1108_v30 = vcombine.low (!%p187_p9), %v224_v26, %v232_v27  ;;  %v1109_v31 = vcombine.high (!%p187_p9), %v224_v26, %v232_v27  ;;  %v233_v33 = vld [vmem:[%s1286_s30 + $0x58] sm:$0x11] (!%p187_p9)  ;;  %v234_v39 = vld [vmem:[%s1286_s30 + $0x60] sm:$0x11] (!%p187_p9)  ;;  %v235_v44 = vld [vmem:[%s1286_s30 + $0x68] sm:$0x11] (!%p187_p9) }
  0x27   : > { %v351_v34 = vand.u32 (!%p187_p9), %v1105_v23, %v1290_v21  ;;  %v348_v35 = vand.u32 (!%p187_p9), %v1104_v25, %v1290_v21  ;;  %v1110_v36 = vcombine.low (!%p187_p9), %v225_v32, %v233_v33  ;;  %v1111_v37 = vcombine.high (!%p187_p9), %v225_v32, %v233_v33  ;;  %249 = vperm.xlu0 (!%p187_p9), %1169, %v239_v54   ;;  %v228_v58 = vld [vmem:[%s1286_s30 + $0x30] sm:$0xff] (!%p187_p9)  ;;  %v229_v61 = vld [vmem:[%s1286_s30 + $0x38] sm:$0xff] (!%p187_p9) }
  0x28   : > { %v357_v40 = vand.u32 %v1107_v28, %v1290_v21  ;;  %v354_v41 = vand.u32 %v1106_v29, %v1290_v21  ;;  %v363_v42 = vand.u32 %v1109_v31, %v1290_v21  ;;  %v1113_v47 = vcombine.high %v226_v38, %v234_v39  ;;  %v236_v59 = vld [vmem:[%s1286_s30 + $0x70] sm:$0x11]  ;;  %v237_v62 = vld [vmem:[%s1286_s30 + $0x78] sm:$0x11]  ;;  %259 = vperm.xlu1 %1170, %v241_v57   ;;  %s1142_s12 = sshll.u32 (%p1249_p5), %s1092_s15, 7 }
  0x29   : > { %395 = vmatprep.subr.bf16.mxu0 %v351_v34  ;;  %v369_v46 = vand.u32 %v1111_v37, %v1290_v21  ;;  %v360_v48 = vand.u32 %v1108_v30, %v1290_v21  ;;  %v1115_v49 = vcombine.high %v227_v43, %v235_v44  ;;  %v366_v51 = vand.u32 %v1110_v36, %v1290_v21  ;;  %s1530_s20 = scalar_lea.vmem (%p1249_p5), %s1670_s3, %s1142_s12 }
  0x2a   : > { %448 = vmatprep.subr.bf16.mxu1 %v357_v40  ;;  %396 = vmatpush1.bf16.msra.mxu0 %v348_v35  ;;  %v375_v52 = vand.u32 %v1113_v47, %v1290_v21  ;;  %v1112_v60 = vcombine.low %v226_v38, %v234_v39  ;;  %v1114_v63 = vcombine.low %v227_v43, %v235_v44 }
  0x2b   : > { %449 = vmatpush1.bf16.msra.mxu1 %v354_v41  ;;  %501 = vmatprep.subr.bf16.mxu0 %v363_v42  ;;  %v381_v53 = vand.u32 %v1115_v49, %v1290_v21  ;;  %v1117_v0 = vcombine.high %v228_v58, %v236_v59  ;;  %v1119_v1 = vcombine.high %v229_v61, %v237_v62 }
  0x2c   : > { %554 = vmatprep.subr.bf16.mxu1 %v369_v46  ;;  %v372_v2 = vand.u32 %v1112_v60, %v1290_v21  ;;  %v378_v3 = vand.u32 %v1114_v63, %v1290_v21  ;;  %v1116_v6 = vcombine.low %v228_v58, %v236_v59  ;;  %v1118_v7 = vcombine.low %v229_v61, %v237_v62 }
  0x2d   : > { %1120 = vmatmul.mubr.msk.bf16.vlgmr.msra.gmra.mrb[0].mxu0 %vm336_vm2, %v1310_v45  ;;  %v387_v4 = vand.u32 %v1117_v0, %v1290_v21  ;;  %v393_v5 = vand.u32 %v1119_v1, %v1290_v21 }
  0x2e   : > { %1122 = vmatmul.mubr.msk.bf16.vlgmr.msra.gmra.mrb[0].mxu1 %vm336_vm2, %v1310_v45  ;;  %502 = vmatpush1.bf16.msra.mxu0 %v360_v48  ;;  %v384_v8 = vand.u32 %v1116_v6, %v1290_v21  ;;  %v390_v9 = vand.u32 %v1118_v7, %v1290_v21 }
  0x2f   : > { %555 = vmatpush1.bf16.msra.mxu1 %v366_v51  ;;  %437 = vmatprep.mubr.bf16.mxu0 %v1198_v18 }
  0x30   : > { %490 = vmatprep.mubr.bf16.mxu1 %v1198_v18  ;;  %607 = vmatprep.subr.bf16.mxu0 %v375_v52 }
  0x31   : > { %660 = vmatprep.subr.bf16.mxu1 %v381_v53 }
  0x35   : > { %1121 = vmatmul.mubr.msk.bf16.gmra.mrb[4].mxu0 %vm336_vm2, %v1172_v56 }
  0x36   : > { %1123 = vmatmul.mubr.msk.bf16.gmra.mrb[4].mxu1 %vm336_vm2, %v1172_v56  ;;  %533 = vmatprep.mubr.bf16.mxu0 %v1198_v18 }
  0x37   : > { %586 = vmatprep.mubr.bf16.mxu1 %v1198_v18 }
  0x3d   : > { %1124 = vmatmul.mubr.msk.bf16.vlgmr.msra.gmra.mrb[8].mxu0 %vm336_vm2, %v1310_v45 }
  0x3e   : > { %1126 = vmatmul.mubr.msk.bf16.vlgmr.msra.gmra.mrb[8].mxu1 %vm336_vm2, %v1310_v45  ;;  %608 = vmatpush1.bf16.msra.mxu0 %v372_v2 }
  0x3f   : > { %661 = vmatpush1.bf16.msra.mxu1 %v378_v3  ;;  %543 = vmatprep.mubr.bf16.mxu0 %v1198_v18 }
  0x40   : > { %596 = vmatprep.mubr.bf16.mxu1 %v1198_v18  ;;  %713 = vmatprep.subr.bf16.mxu0 %v387_v4 }
  0x41   : > { %766 = vmatprep.subr.bf16.mxu1 %v393_v5 }
  0x45   : > { %1125 = vmatmul.mubr.msk.bf16.gmra.mrb[12].mxu0 %vm336_vm2, %v1172_v56 }
  0x46   : > { %1127 = vmatmul.mubr.msk.bf16.gmra.mrb[12].mxu1 %vm336_vm2, %v1172_v56  ;;  %639 = vmatprep.mubr.bf16.mxu0 %v1198_v18 }
  0x47   : > { %692 = vmatprep.mubr.bf16.mxu1 %v1198_v18 }
  0x4d   : > { %1128 = vmatmul.mubr.msk.bf16.vlgmr.msra.gmra.mrb[16].mxu0 %vm336_vm2, %v1310_v45 }
  0x4e   : > { %1130 = vmatmul.mubr.msk.bf16.vlgmr.msra.gmra.mrb[16].mxu1 %vm336_vm2, %v1310_v45  ;;  %714 = vmatpush1.bf16.msra.mxu0 %v384_v8 }
  0x4f   : > { %767 = vmatpush1.bf16.msra.mxu1 %v390_v9  ;;  %649 = vmatprep.mubr.bf16.mxu0 %v1198_v18 }
  0x50   : > { %702 = vmatprep.mubr.bf16.mxu1 %v1198_v18 }
  0x55   : > { %1129 = vmatmul.mubr.msk.bf16.gmra.mrb[20].mxu0 %vm336_vm2, %v1172_v56 }
  0x56   : > { %1131 = vmatmul.mubr.msk.bf16.gmra.mrb[20].mxu1 %vm336_vm2, %v1172_v56  ;;  %745 = vmatprep.mubr.bf16.mxu0 %v1198_v18 }
  0x57   : > { %798 = vmatprep.mubr.bf16.mxu1 %v1198_v18 }
  0x5d   : > { %1132 = vmatmul.mubr.msk.bf16.vlgmr.msra.gmra.mrb[24].mxu0 %vm336_vm2, %v1310_v45 }
  0x5e   : > { %1134 = vmatmul.mubr.msk.bf16.vlgmr.msra.gmra.mrb[24].mxu1 %vm336_vm2, %v1310_v45  ;;  %755 = vmatprep.mubr.bf16.mxu0 %v1198_v18 }
  0x5f   : > { %808 = vmatprep.mubr.bf16.mxu1 %v1198_v18 }
  0x65   : > { %1133 = vmatmul.mubr.msk.bf16.gmra.mrb[28].mxu0 %vm336_vm2, %v1172_v56 }
  0x66   : > { %1135 = vmatmul.mubr.msk.bf16.gmra.mrb[28].mxu1 %vm336_vm2, %v1172_v56 }
  0xa2   : > { %v1380_v10 = vpop.permute.xlu0 %244  ;;  %v1386_v13 = vpop.permute.xlu1 %254 }
  0xa6   : > { %v1384_v11 = vpop.permute.xlu0 %249 }
  0xa7   : > { %v1406_v30 = vpop.permute.xlu1 %259 }
 0x100   : > { %v429_v12 = vpop.f32.mrb[0].mxu0 }
 0x101   : > { %v430_v14 = vadd.f32 %v429_v12, %v1380_v10  ;;  %v482_v15 = vpop.f32.mrb[0].mxu1  ;;  %v431_v16 = vpop.f32.mrb[1].mxu0 }
 0x102   : > { %v483_v17 = vadd.f32 %v482_v15, %v1380_v10  ;;  %v432_v18 = vadd.f32 %v431_v16, %v1380_v10  ;;  %v484_v19 = vpop.f32.mrb[1].mxu1  ;;  %v433_v20 = vpop.f32.mrb[2].mxu0 }
 0x103   : > { %819 = vst [vmem:[%s1391_s24] sm:$0xff] %v430_v14  ;;  %v485_v21 = vadd.f32 %v484_v19, %v1380_v10  ;;  %v434_v22 = vadd.f32 %v433_v20, %v1384_v11  ;;  %v486_v23 = vpop.f32.mrb[2].mxu1  ;;  %v435_v24 = vpop.f32.mrb[3].mxu0 }
 0x104   : > { %821 = vst [vmem:[%s1391_s24 + $0x10] sm:$0xff] %v483_v17  ;;  %820 = vst [vmem:[%s1391_s24 + $0x8] sm:$0xff] %v432_v18  ;;  %v487_v25 = vadd.f32 %v486_v23, %v1384_v11  ;;  %v436_v26 = vadd.f32 %v435_v24, %v1384_v11  ;;  %v488_v27 = vpop.f32.mrb[3].mxu1 }
 0x105   : > { %822 = vst [vmem:[%s1391_s24 + $0x18] sm:$0xff] %v485_v21  ;;  %835 = vst [vmem:[%s1391_s24 + $0x80] sm:$0xff] %v434_v22  ;;  %v489_v28 = vadd.f32 %v488_v27, %v1384_v11 }
 0x106   : > { %837 = vst [vmem:[%s1391_s24 + $0x90] sm:$0xff] %v487_v25  ;;  %836 = vst [vmem:[%s1391_s24 + $0x88] sm:$0xff] %v436_v26 }
 0x107   : > { %838 = vst [vmem:[%s1391_s24 + $0x98] sm:$0xff] %v489_v28 }
 0x108   : > { %v439_v29 = vpop.f32.mrb[4].mxu0 }
 0x109   : > { %v440_v31 = vadd.f32 %v439_v29, %v1386_v13  ;;  %v492_v32 = vpop.f32.mrb[4].mxu1  ;;  %v441_v33 = vpop.f32.mrb[5].mxu0 }
 0x10a   : > { %v493_v34 = vadd.f32 %v492_v32, %v1386_v13  ;;  %v442_v35 = vadd.f32 %v441_v33, %v1386_v13  ;;  %v494_v36 = vpop.f32.mrb[5].mxu1  ;;  %v443_v37 = vpop.f32.mrb[6].mxu0 }
 0x10b   : > { %851 = vst [vmem:[%s1391_s24 + $0x100] sm:$0xff] %v440_v31  ;;  %v495_v38 = vadd.f32 %v494_v36, %v1386_v13  ;;  %v444_v39 = vadd.f32 %v443_v37, %v1406_v30  ;;  %v496_v40 = vpop.f32.mrb[6].mxu1  ;;  %v445_v41 = vpop.f32.mrb[7].mxu0 }
 0x10c   : > { %853 = vst [vmem:[%s1391_s24 + $0x110] sm:$0xff] %v493_v34  ;;  %852 = vst [vmem:[%s1391_s24 + $0x108] sm:$0xff] %v442_v35  ;;  %v497_v42 = vadd.f32 %v496_v40, %v1406_v30  ;;  %v446_v43 = vadd.f32 %v445_v41, %v1406_v30  ;;  %v498_v44 = vpop.f32.mrb[7].mxu1 }
 0x10d   : > { %854 = vst [vmem:[%s1391_s24 + $0x118] sm:$0xff] %v495_v38  ;;  %867 = vst [vmem:[%s1391_s24 + $0x180] sm:$0xff] %v444_v39  ;;  %v499_v45 = vadd.f32 %v498_v44, %v1406_v30 }
 0x10e   : > { %869 = vst [vmem:[%s1391_s24 + $0x190] sm:$0xff] %v497_v42  ;;  %868 = vst [vmem:[%s1391_s24 + $0x188] sm:$0xff] %v446_v43 }
 0x10f   : > { %870 = vst [vmem:[%s1391_s24 + $0x198] sm:$0xff] %v499_v45 }
 0x110   : > { %v535_v46 = vpop.f32.mrb[8].mxu0 }
 0x111   : > { %v536_v47 = vadd.f32 %v535_v46, %v1380_v10  ;;  %v588_v48 = vpop.f32.mrb[8].mxu1  ;;  %v537_v49 = vpop.f32.mrb[9].mxu0 }
 0x112   : > { %v589_v50 = vadd.f32 %v588_v48, %v1380_v10  ;;  %v538_v51 = vadd.f32 %v537_v49, %v1380_v10  ;;  %v590_v52 = vpop.f32.mrb[9].mxu1  ;;  %v539_v53 = vpop.f32.mrb[10].mxu0 }
 0x113   : > { %823 = vst [vmem:[%s1391_s24 + $0x20] sm:$0xff] %v536_v47  ;;  %v591_v54 = vadd.f32 %v590_v52, %v1380_v10  ;;  %v540_v55 = vadd.f32 %v539_v53, %v1384_v11  ;;  %v592_v56 = vpop.f32.mrb[10].mxu1  ;;  %v541_v57 = vpop.f32.mrb[11].mxu0 }
 0x114   : > { %825 = vst [vmem:[%s1391_s24 + $0x30] sm:$0xff] %v589_v50  ;;  %824 = vst [vmem:[%s1391_s24 + $0x28] sm:$0xff] %v538_v51  ;;  %v593_v58 = vadd.f32 %v592_v56, %v1384_v11  ;;  %v542_v59 = vadd.f32 %v541_v57, %v1384_v11  ;;  %v594_v60 = vpop.f32.mrb[11].mxu1 }
 0x115   : > { %826 = vst [vmem:[%s1391_s24 + $0x38] sm:$0xff] %v591_v54  ;;  %839 = vst [vmem:[%s1391_s24 + $0xa0] sm:$0xff] %v540_v55  ;;  %v595_v61 = vadd.f32 %v594_v60, %v1384_v11 }
 0x116   : > { %841 = vst [vmem:[%s1391_s24 + $0xb0] sm:$0xff] %v593_v58  ;;  %840 = vst [vmem:[%s1391_s24 + $0xa8] sm:$0xff] %v542_v59 }
 0x117   : > { %842 = vst [vmem:[%s1391_s24 + $0xb8] sm:$0xff] %v595_v61 }
 0x118   : > { %v545_v62 = vpop.f32.mrb[12].mxu0 }
 0x119   : > { %v546_v63 = vadd.f32 %v545_v62, %v1386_v13  ;;  %v598_v0 = vpop.f32.mrb[12].mxu1  ;;  %v547_v1 = vpop.f32.mrb[13].mxu0 }
 0x11a   : > { %v599_v2 = vadd.f32 %v598_v0, %v1386_v13  ;;  %v548_v3 = vadd.f32 %v547_v1, %v1386_v13  ;;  %v600_v4 = vpop.f32.mrb[13].mxu1  ;;  %v549_v5 = vpop.f32.mrb[14].mxu0 }
 0x11b   : > { %855 = vst [vmem:[%s1391_s24 + $0x120] sm:$0xff] %v546_v63  ;;  %v601_v6 = vadd.f32 %v600_v4, %v1386_v13  ;;  %v550_v7 = vadd.f32 %v549_v5, %v1406_v30  ;;  %v602_v8 = vpop.f32.mrb[14].mxu1  ;;  %v551_v9 = vpop.f32.mrb[15].mxu0 }
 0x11c   : > { %857 = vst [vmem:[%s1391_s24 + $0x130] sm:$0xff] %v599_v2  ;;  %856 = vst [vmem:[%s1391_s24 + $0x128] sm:$0xff] %v548_v3  ;;  %v603_v12 = vadd.f32 %v602_v8, %v1406_v30  ;;  %v552_v14 = vadd.f32 %v551_v9, %v1406_v30  ;;  %v604_v15 = vpop.f32.mrb[15].mxu1 }
 0x11d   : > { %858 = vst [vmem:[%s1391_s24 + $0x138] sm:$0xff] %v601_v6  ;;  %871 = vst [vmem:[%s1391_s24 + $0x1a0] sm:$0xff] %v550_v7  ;;  %v605_v16 = vadd.f32 %v604_v15, %v1406_v30 }
 0x11e   : > { %873 = vst [vmem:[%s1391_s24 + $0x1b0] sm:$0xff] %v603_v12  ;;  %872 = vst [vmem:[%s1391_s24 + $0x1a8] sm:$0xff] %v552_v14 }
 0x11f   : > { %874 = vst [vmem:[%s1391_s24 + $0x1b8] sm:$0xff] %v605_v16 }
 0x120   : > { %v641_v17 = vpop.f32.mrb[16].mxu0 }
 0x121   : > { %v642_v18 = vadd.f32 %v641_v17, %v1380_v10  ;;  %v694_v19 = vpop.f32.mrb[16].mxu1  ;;  %v643_v20 = vpop.f32.mrb[17].mxu0 }
 0x122   : > { %v695_v21 = vadd.f32 %v694_v19, %v1380_v10  ;;  %v644_v22 = vadd.f32 %v643_v20, %v1380_v10  ;;  %v696_v23 = vpop.f32.mrb[17].mxu1  ;;  %v645_v24 = vpop.f32.mrb[18].mxu0  ;;  %v909_v19 = vld [vmem:[%s1391_s24 + $0x10] sm:$0xff] (%p1249_p5)  ;;  %v911_v20 = vld [vmem:[%s1391_s24 + $0x18] sm:$0xff] (%p1249_p5) }
 0x123   : > { %827 = vst [vmem:[%s1391_s24 + $0x40] sm:$0xff] %v642_v18  ;;  %v697_v25 = vadd.f32 %v696_v23, %v1380_v10  ;;  %v646_v26 = vadd.f32 %v645_v24, %v1384_v11  ;;  %v698_v27 = vpop.f32.mrb[18].mxu1  ;;  %v647_v28 = vpop.f32.mrb[19].mxu0  ;;  %910 = vst [vmem:[%s1530_s20 + $0x10] sm:$0xff] (%p1249_p5), %v909_v19  ;;  %v917_v23 = vld [vmem:[%s1391_s24 + $0x30] sm:$0xff] (%p1249_p5)  ;;  %v919_v24 = vld [vmem:[%s1391_s24 + $0x38] sm:$0xff] (%p1249_p5) }
 0x124   : > { %829 = vst [vmem:[%s1391_s24 + $0x50] sm:$0xff] %v695_v21  ;;  %828 = vst [vmem:[%s1391_s24 + $0x48] sm:$0xff] %v644_v22  ;;  %v699_v29 = vadd.f32 %v698_v27, %v1384_v11  ;;  %v648_v31 = vadd.f32 %v647_v28, %v1384_v11  ;;  %v700_v32 = vpop.f32.mrb[19].mxu1  ;;  %v913_v21 = vld [vmem:[%s1391_s24 + $0x20] sm:$0xff] (%p1249_p5)  ;;  %v915_v22 = vld [vmem:[%s1391_s24 + $0x28] sm:$0xff] (%p1249_p5) }
 0x125   : > { %830 = vst [vmem:[%s1391_s24 + $0x58] sm:$0xff] %v697_v25  ;;  %843 = vst [vmem:[%s1391_s24 + $0xc0] sm:$0xff] %v646_v26  ;;  %v701_v33 = vadd.f32 %v700_v32, %v1384_v11 }
 0x126   : > { %845 = vst [vmem:[%s1391_s24 + $0xd0] sm:$0xff] %v699_v29  ;;  %844 = vst [vmem:[%s1391_s24 + $0xc8] sm:$0xff] %v648_v31 }
 0x127   : > { %846 = vst [vmem:[%s1391_s24 + $0xd8] sm:$0xff] %v701_v33  ;;  %912 = vst [vmem:[%s1530_s20 + $0x18] sm:$0xff] (%p1249_p5), %v911_v20 }
 0x128   : > { %v651_v34 = vpop.f32.mrb[20].mxu0  ;;  %914 = vst [vmem:[%s1530_s20 + $0x20] sm:$0xff] (%p1249_p5), %v913_v21  ;;  %916 = vst [vmem:[%s1530_s20 + $0x28] sm:$0xff] (%p1249_p5), %v915_v22 }
 0x129   : > { %v652_v35 = vadd.f32 %v651_v34, %v1386_v13  ;;  %v704_v36 = vpop.f32.mrb[20].mxu1  ;;  %v653_v37 = vpop.f32.mrb[21].mxu0  ;;  %918 = vst [vmem:[%s1530_s20 + $0x30] sm:$0xff] (%p1249_p5), %v917_v23  ;;  %920 = vst [vmem:[%s1530_s20 + $0x38] sm:$0xff] (%p1249_p5), %v919_v24  ;;  %v937_v34 = vld [vmem:[%s1391_s24 + $0x80] sm:$0xff] (%p1249_p5) }
 0x12a   : > { %v705_v38 = vadd.f32 %v704_v36, %v1386_v13  ;;  %v654_v39 = vadd.f32 %v653_v37, %v1386_v13  ;;  %v706_v40 = vpop.f32.mrb[21].mxu1  ;;  %v655_v41 = vpop.f32.mrb[22].mxu0  ;;  %v921_v25 = vld [vmem:[%s1391_s24 + $0x40] sm:$0xff] (%p1249_p5)  ;;  %938 = vst [vmem:[%s1530_s20 + $0x100] sm:$0xff] (%p1249_p5), %v937_v34  ;;  %v941_v36 = vld [vmem:[%s1391_s24 + $0x90] sm:$0xff] (%p1249_p5)  ;;  %v943_v37 = vld [vmem:[%s1391_s24 + $0x98] sm:$0xff] (%p1249_p5) }
 0x12b   : > { %859 = vst [vmem:[%s1391_s24 + $0x140] sm:$0xff] %v652_v35  ;;  %v707_v42 = vadd.f32 %v706_v40, %v1386_v13  ;;  %v656_v43 = vadd.f32 %v655_v41, %v1406_v30  ;;  %v708_v44 = vpop.f32.mrb[22].mxu1  ;;  %v657_v45 = vpop.f32.mrb[23].mxu0  ;;  %922 = vst [vmem:[%s1530_s20 + $0x40] sm:$0xff] (%p1249_p5), %v921_v25  ;;  %v923_v26 = vld [vmem:[%s1391_s24 + $0x48] sm:$0xff] (%p1249_p5)  ;;  %v925_v27 = vld [vmem:[%s1391_s24 + $0x50] sm:$0xff] (%p1249_p5) }
 0x12c   : > { %861 = vst [vmem:[%s1391_s24 + $0x150] sm:$0xff] %v705_v38  ;;  %860 = vst [vmem:[%s1391_s24 + $0x148] sm:$0xff] %v654_v39  ;;  %v709_v46 = vadd.f32 %v708_v44, %v1406_v30  ;;  %v658_v47 = vadd.f32 %v657_v45, %v1406_v30  ;;  %v710_v48 = vpop.f32.mrb[23].mxu1  ;;  %v927_v28 = vld [vmem:[%s1391_s24 + $0x58] sm:$0xff] (%p1249_p5)  ;;  %v939_v35 = vld [vmem:[%s1391_s24 + $0x88] sm:$0xff] (%p1249_p5) }
 0x12d   : > { %862 = vst [vmem:[%s1391_s24 + $0x158] sm:$0xff] %v707_v42  ;;  %875 = vst [vmem:[%s1391_s24 + $0x1c0] sm:$0xff] %v656_v43  ;;  %v711_v49 = vadd.f32 %v710_v48, %v1406_v30  ;;  %v945_v38 = vld [vmem:[%s1391_s24 + $0xa0] sm:$0xff] (%p1249_p5)  ;;  %v947_v39 = vld [vmem:[%s1391_s24 + $0xa8] sm:$0xff] (%p1249_p5) }
 0x12e   : > { %877 = vst [vmem:[%s1391_s24 + $0x1d0] sm:$0xff] %v709_v46  ;;  %876 = vst [vmem:[%s1391_s24 + $0x1c8] sm:$0xff] %v658_v47  ;;  %v949_v40 = vld [vmem:[%s1391_s24 + $0xb0] sm:$0xff] (%p1249_p5)  ;;  %v951_v41 = vld [vmem:[%s1391_s24 + $0xb8] sm:$0xff] (%p1249_p5) }
 0x12f   : > { %878 = vst [vmem:[%s1391_s24 + $0x1d8] sm:$0xff] %v711_v49  ;;  %924 = vst [vmem:[%s1530_s20 + $0x48] sm:$0xff] (%p1249_p5), %v923_v26  ;;  %v953_v42 = vld [vmem:[%s1391_s24 + $0xc0] sm:$0xff] (%p1249_p5)  ;;  %v955_v43 = vld [vmem:[%s1391_s24 + $0xc8] sm:$0xff] (%p1249_p5) }
 0x130   : > { %v747_v50 = vpop.f32.mrb[24].mxu0  ;;  %926 = vst [vmem:[%s1530_s20 + $0x50] sm:$0xff] (%p1249_p5), %v925_v27  ;;  %928 = vst [vmem:[%s1530_s20 + $0x58] sm:$0xff] (%p1249_p5), %v927_v28  ;;  %v957_v44 = vld [vmem:[%s1391_s24 + $0xd0] sm:$0xff] (%p1249_p5)  ;;  %v959_v45 = vld [vmem:[%s1391_s24 + $0xd8] sm:$0xff] (%p1249_p5) }
 0x131   : > { %v748_v51 = vadd.f32 %v747_v50, %v1380_v10  ;;  %v800_v52 = vpop.f32.mrb[24].mxu1  ;;  %v749_v53 = vpop.f32.mrb[25].mxu0  ;;  %940 = vst [vmem:[%s1530_s20 + $0x108] sm:$0xff] (%p1249_p5), %v939_v35  ;;  %942 = vst [vmem:[%s1530_s20 + $0x110] sm:$0xff] (%p1249_p5), %v941_v36  ;;  %v969_v50 = vld [vmem:[%s1391_s24 + $0x100] sm:$0xff] (%p1249_p5) }
 0x132   : > { %v801_v54 = vadd.f32 %v800_v52, %v1380_v10  ;;  %v750_v55 = vadd.f32 %v749_v53, %v1380_v10  ;;  %v802_v56 = vpop.f32.mrb[25].mxu1  ;;  %v751_v57 = vpop.f32.mrb[26].mxu0  ;;  %944 = vst [vmem:[%s1530_s20 + $0x118] sm:$0xff] (%p1249_p5), %v943_v37  ;;  %946 = vst [vmem:[%s1530_s20 + $0x120] sm:$0xff] (%p1249_p5), %v945_v38  ;;  %v973_v52 = vld [vmem:[%s1391_s24 + $0x110] sm:$0xff] (%p1249_p5)  ;;  %v975_v53 = vld [vmem:[%s1391_s24 + $0x118] sm:$0xff] (%p1249_p5) }
 0x133   : > { %831 = vst [vmem:[%s1391_s24 + $0x60] sm:$0xff] %v748_v51  ;;  %v803_v58 = vadd.f32 %v802_v56, %v1380_v10  ;;  %v752_v59 = vadd.f32 %v751_v57, %v1384_v11  ;;  %v804_v60 = vpop.f32.mrb[26].mxu1  ;;  %v753_v61 = vpop.f32.mrb[27].mxu0  ;;  %948 = vst [vmem:[%s1530_s20 + $0x128] sm:$0xff] (%p1249_p5), %v947_v39  ;;  %v971_v51 = vld [vmem:[%s1391_s24 + $0x108] sm:$0xff] (%p1249_p5)  ;;  %v981_v56 = vld [vmem:[%s1391_s24 + $0x130] sm:$0xff] (%p1249_p5) }
 0x134   : > { %833 = vst [vmem:[%s1391_s24 + $0x70] sm:$0xff] %v801_v54  ;;  %832 = vst [vmem:[%s1391_s24 + $0x68] sm:$0xff] %v750_v55  ;;  %v805_v62 = vadd.f32 %v804_v60, %v1384_v11  ;;  %v754_v63 = vadd.f32 %v753_v61, %v1384_v11  ;;  %v806_v0 = vpop.f32.mrb[27].mxu1  ;;  %v977_v54 = vld [vmem:[%s1391_s24 + $0x120] sm:$0xff] (%p1249_p5)  ;;  %v979_v55 = vld [vmem:[%s1391_s24 + $0x128] sm:$0xff] (%p1249_p5) }
 0x135   : > { %834 = vst [vmem:[%s1391_s24 + $0x78] sm:$0xff] %v803_v58  ;;  %847 = vst [vmem:[%s1391_s24 + $0xe0] sm:$0xff] %v752_v59  ;;  %v807_v1 = vadd.f32 %v806_v0, %v1384_v11  ;;  %v983_v57 = vld [vmem:[%s1391_s24 + $0x138] sm:$0xff] (%p1249_p5)  ;;  %v985_v58 = vld [vmem:[%s1391_s24 + $0x140] sm:$0xff] (%p1249_p5) }
 0x136   : > { %849 = vst [vmem:[%s1391_s24 + $0xf0] sm:$0xff] %v805_v62  ;;  %848 = vst [vmem:[%s1391_s24 + $0xe8] sm:$0xff] %v754_v63  ;;  %v987_v59 = vld [vmem:[%s1391_s24 + $0x148] sm:$0xff] (%p1249_p5)  ;;  %v989_v60 = vld [vmem:[%s1391_s24 + $0x150] sm:$0xff] (%p1249_p5) }
 0x137   : > { %850 = vst [vmem:[%s1391_s24 + $0xf8] sm:$0xff] %v807_v1  ;;  %950 = vst [vmem:[%s1530_s20 + $0x130] sm:$0xff] (%p1249_p5), %v949_v40  ;;  %v991_v61 = vld [vmem:[%s1391_s24 + $0x158] sm:$0xff] (%p1249_p5) }
 0x138   : > { %v757_v10 = vpop.f32.mrb[28].mxu0  ;;  %952 = vst [vmem:[%s1530_s20 + $0x138] sm:$0xff] (%p1249_p5), %v951_v41  ;;  %954 = vst [vmem:[%s1530_s20 + $0x140] sm:$0xff] (%p1249_p5), %v953_v42 }
 0x139   : > { %v758_v2 = vadd.f32 %v757_v10, %v1386_v13  ;;  %v810_v3 = vpop.f32.mrb[28].mxu1  ;;  %v759_v4 = vpop.f32.mrb[29].mxu0  ;;  %889 = sbr.rel (!%p1249_p5) target bundleno = 340 (0x154), region = 59  ;;  %956 = vst [vmem:[%s1530_s20 + $0x148] sm:$0xff] (%p1249_p5), %v955_v43  ;;  %958 = vst [vmem:[%s1530_s20 + $0x150] sm:$0xff] (%p1249_p5), %v957_v44  ;;  %v1001_v10 = vld [vmem:[%s1391_s24 + $0x180] sm:$0xff] (%p1249_p5) }
 0x13a   : > { %v811_v5 = vadd.f32 %v810_v3, %v1386_v13  ;;  %v760_v6 = vadd.f32 %v759_v4, %v1386_v13  ;;  %v812_v7 = vpop.f32.mrb[29].mxu1  ;;  %v761_v11 = vpop.f32.mrb[30].mxu0  ;;  %v929_v29 = vld [vmem:[%s1391_s24 + $0x60] sm:$0xff] (%p1249_p5)  ;;  %960 = vst [vmem:[%s1530_s20 + $0x158] sm:$0xff] (%p1249_p5), %v959_v45  ;;  %970 = vst [vmem:[%s1530_s20 + $0x200] sm:$0xff] (%p1249_p5), %v969_v50  ;;  %v1005_v3 = vld [vmem:[%s1391_s24 + $0x190] sm:$0xff] (%p1249_p5) }
 0x13b   : > { %863 = vst [vmem:[%s1391_s24 + $0x160] sm:$0xff] %v758_v2  ;;  %v813_v8 = vadd.f32 %v812_v7, %v1386_v13  ;;  %v762_v9 = vadd.f32 %v761_v11, %v1406_v30  ;;  %v814_v12 = vpop.f32.mrb[30].mxu1  ;;  %v763_v14 = vpop.f32.mrb[31].mxu0  ;;  %v905_v13 = vld [vmem:[%s1391_s24] sm:$0xff] (%p1249_p5)  ;;  %v931_v31 = vld [vmem:[%s1391_s24 + $0x68] sm:$0xff] (%p1249_p5)  ;;  %v933_v32 = vld [vmem:[%s1391_s24 + $0x70] sm:$0xff] (%p1249_p5) }
 0x13c   : > { %865 = vst [vmem:[%s1391_s24 + $0x170] sm:$0xff] %v811_v5  ;;  %864 = vst [vmem:[%s1391_s24 + $0x168] sm:$0xff] %v760_v6  ;;  %v815_v15 = vadd.f32 %v814_v12, %v1406_v30  ;;  %v764_v16 = vadd.f32 %v763_v14, %v1406_v30  ;;  %v816_v17 = vpop.f32.mrb[31].mxu1  ;;  %v935_v33 = vld [vmem:[%s1391_s24 + $0x78] sm:$0xff] (%p1249_p5)  ;;  %v961_v46 = vld [vmem:[%s1391_s24 + $0xe0] sm:$0xff] (%p1249_p5) }
 0x13d   : > { %866 = vst [vmem:[%s1391_s24 + $0x178] sm:$0xff] %v813_v8  ;;  %879 = vst [vmem:[%s1391_s24 + $0x1e0] sm:$0xff] %v762_v9  ;;  %v817_v18 = vadd.f32 %v816_v17, %v1406_v30  ;;  %v907_v30 = vld [vmem:[%s1391_s24 + $0x8] sm:$0xff] (%p1249_p5)  ;;  %v965_v48 = vld [vmem:[%s1391_s24 + $0xf0] sm:$0xff] (%p1249_p5) }
 0x13e   : > { %881 = vst [vmem:[%s1391_s24 + $0x1f0] sm:$0xff] %v815_v15  ;;  %880 = vst [vmem:[%s1391_s24 + $0x1e8] sm:$0xff] %v764_v16  ;;  %v963_v47 = vld [vmem:[%s1391_s24 + $0xe8] sm:$0xff] (%p1249_p5)  ;;  %v967_v49 = vld [vmem:[%s1391_s24 + $0xf8] sm:$0xff] (%p1249_p5) }
 0x13f   : > { %882 = vst [vmem:[%s1391_s24 + $0x1f8] sm:$0xff] %v817_v18  ;;  %906 = vst [vmem:[%s1530_s20] sm:$0xff] (%p1249_p5), %v905_v13  ;;  %v1003_v2 = vld [vmem:[%s1391_s24 + $0x188] sm:$0xff] (%p1249_p5)  ;;  %v1007_v4 = vld [vmem:[%s1391_s24 + $0x198] sm:$0xff] (%p1249_p5) }
 0x140   : > { %908 = vst [vmem:[%s1530_s20 + $0x8] sm:$0xff] %v907_v30  ;;  %930 = vst [vmem:[%s1530_s20 + $0x60] sm:$0xff] %v929_v29  ;;  %v1009_v5 = vld [vmem:[%s1391_s24 + $0x1a0] sm:$0xff]  ;;  %v1011_v6 = vld [vmem:[%s1391_s24 + $0x1a8] sm:$0xff] }
 0x141   : > { %932 = vst [vmem:[%s1530_s20 + $0x68] sm:$0xff] %v931_v31  ;;  %934 = vst [vmem:[%s1530_s20 + $0x70] sm:$0xff] %v933_v32  ;;  %v1013_v7 = vld [vmem:[%s1391_s24 + $0x1b0] sm:$0xff]  ;;  %v1015_v11 = vld [vmem:[%s1391_s24 + $0x1b8] sm:$0xff] }
 0x142   : > { %936 = vst [vmem:[%s1530_s20 + $0x78] sm:$0xff] %v935_v33  ;;  %962 = vst [vmem:[%s1530_s20 + $0x160] sm:$0xff] %v961_v46  ;;  %v993_v62 = vld [vmem:[%s1391_s24 + $0x160] sm:$0xff]  ;;  %v1019_v9 = vld [vmem:[%s1391_s24 + $0x1c8] sm:$0xff] }
 0x143   : > { %964 = vst [vmem:[%s1530_s20 + $0x168] sm:$0xff] %v963_v47  ;;  %966 = vst [vmem:[%s1530_s20 + $0x170] sm:$0xff] %v965_v48  ;;  %v995_v63 = vld [vmem:[%s1391_s24 + $0x168] sm:$0xff]  ;;  %v997_v0 = vld [vmem:[%s1391_s24 + $0x170] sm:$0xff] }
 0x144   : > { %968 = vst [vmem:[%s1530_s20 + $0x178] sm:$0xff] %v967_v49  ;;  %972 = vst [vmem:[%s1530_s20 + $0x208] sm:$0xff] %v971_v51  ;;  %v999_v1 = vld [vmem:[%s1391_s24 + $0x178] sm:$0xff]  ;;  %v1017_v8 = vld [vmem:[%s1391_s24 + $0x1c0] sm:$0xff] }
 0x145   : > { %974 = vst [vmem:[%s1530_s20 + $0x210] sm:$0xff] %v973_v52  ;;  %976 = vst [vmem:[%s1530_s20 + $0x218] sm:$0xff] %v975_v53  ;;  %v1021_v12 = vld [vmem:[%s1391_s24 + $0x1d0] sm:$0xff]  ;;  %v1023_v14 = vld [vmem:[%s1391_s24 + $0x1d8] sm:$0xff] }
 0x146   : > { %978 = vst [vmem:[%s1530_s20 + $0x220] sm:$0xff] %v977_v54  ;;  %980 = vst [vmem:[%s1530_s20 + $0x228] sm:$0xff] %v979_v55  ;;  %v1025_v15 = vld [vmem:[%s1391_s24 + $0x1e0] sm:$0xff]  ;;  %v1027_v16 = vld [vmem:[%s1391_s24 + $0x1e8] sm:$0xff] }
 0x147   : > { %982 = vst [vmem:[%s1530_s20 + $0x230] sm:$0xff] %v981_v56  ;;  %984 = vst [vmem:[%s1530_s20 + $0x238] sm:$0xff] %v983_v57  ;;  %v1029_v17 = vld [vmem:[%s1391_s24 + $0x1f0] sm:$0xff]  ;;  %v1031_v18 = vld [vmem:[%s1391_s24 + $0x1f8] sm:$0xff] }
 0x148   : > { %986 = vst [vmem:[%s1530_s20 + $0x240] sm:$0xff] %v985_v58  ;;  %988 = vst [vmem:[%s1530_s20 + $0x248] sm:$0xff] %v987_v59 }
 0x149   : > { %990 = vst [vmem:[%s1530_s20 + $0x250] sm:$0xff] %v989_v60  ;;  %992 = vst [vmem:[%s1530_s20 + $0x258] sm:$0xff] %v991_v61 }
 0x14a   : > { %994 = vst [vmem:[%s1530_s20 + $0x260] sm:$0xff] %v993_v62  ;;  %996 = vst [vmem:[%s1530_s20 + $0x268] sm:$0xff] %v995_v63 }
 0x14b   : > { %998 = vst [vmem:[%s1530_s20 + $0x270] sm:$0xff] %v997_v0  ;;  %1000 = vst [vmem:[%s1530_s20 + $0x278] sm:$0xff] %v999_v1 }
 0x14c   : > { %1002 = vst [vmem:[%s1530_s20 + $0x300] sm:$0xff] %v1001_v10  ;;  %1004 = vst [vmem:[%s1530_s20 + $0x308] sm:$0xff] %v1003_v2 }
 0x14d   : > { %1006 = vst [vmem:[%s1530_s20 + $0x310] sm:$0xff] %v1005_v3  ;;  %1008 = vst [vmem:[%s1530_s20 + $0x318] sm:$0xff] %v1007_v4 }
 0x14e   : > { %1010 = vst [vmem:[%s1530_s20 + $0x320] sm:$0xff] %v1009_v5  ;;  %1012 = vst [vmem:[%s1530_s20 + $0x328] sm:$0xff] %v1011_v6 }
 0x14f   : > { %1014 = vst [vmem:[%s1530_s20 + $0x330] sm:$0xff] %v1013_v7  ;;  %1016 = vst [vmem:[%s1530_s20 + $0x338] sm:$0xff] %v1015_v11 }
 0x150   : > { %1018 = vst [vmem:[%s1530_s20 + $0x340] sm:$0xff] %v1017_v8  ;;  %1020 = vst [vmem:[%s1530_s20 + $0x348] sm:$0xff] %v1019_v9 }
 0x151   : > { %1022 = vst [vmem:[%s1530_s20 + $0x350] sm:$0xff] %v1021_v12  ;;  %1024 = vst [vmem:[%s1530_s20 + $0x358] sm:$0xff] %v1023_v14 }
 0x152   : > { %1026 = vst [vmem:[%s1530_s20 + $0x360] sm:$0xff] %v1025_v15  ;;  %1028 = vst [vmem:[%s1530_s20 + $0x368] sm:$0xff] %v1027_v16 }
 0x153   : > { %1030 = vst [vmem:[%s1530_s20 + $0x370] sm:$0xff] %v1029_v17  ;;  %1032 = vst [vmem:[%s1530_s20 + $0x378] sm:$0xff] %v1031_v18 }
 0x154 PF: > { %p10_p10 = scmp.ge.s32.totalorder %s1236_s16, 4   ;;  %s1672_s12 = smov %s1191_s13 }
 0x155   : > { %s1673_s13 = smov %s1247_s19  ;;  %s1674_s14 = smov %s1236_s16 }
 0x156   :  { %12 = sbr.rel (!%p10_p10) target bundleno = 2 (0x2), region = 113 }

</bundles_post_ra>
